<compile_context>
chip_gen: v7x
topology: tpu7x:2x2x1
jax: 0.10.0
libtpu: 0.0.40
codegen_flags: <defaults>
</compile_context>

<pallas_src>
import math
from functools import partial

import jax
import jax.numpy as jnp
from jax.experimental import pallas as pl
from jax.experimental.pallas import tpu as pltpu


# ---------------------------------------------------------------------------
# Helpers
# ---------------------------------------------------------------------------
def _divisor_tile(dim, target, quantum):
    """Largest t <= target with dim % t == 0 and t % quantum == 0, else dim."""
    if dim <= target:
        return dim
    t = (target // quantum) * quantum
    while t >= quantum:
        if dim % t == 0:
            return t
        t -= quantum
    return dim


def _vmem_limit(est_bytes):
    # Explicit scoped-VMEM limit derived from the tile sizes; capped so it is
    # valid on v7x (64 MiB physical) as well as v5e/v6e.
    return int(min(max(1.25 * est_bytes, 32 * 1024 * 1024), 64 * 1024 * 1024))


# ---------------------------------------------------------------------------
# Linear (x @ W + b) kernel — rows and weight-columns tiled.
# ---------------------------------------------------------------------------
def _linear_kernel(x_ref, w_ref, b_ref, o_ref):
    # x_ref: (tm, K)   w_ref: (K, tn)   b_ref: (1, tn) f32   o_ref: (tm, tn)
    acc = jnp.dot(x_ref[...], w_ref[...], preferred_element_type=jnp.float32)
    o_ref[...] = (acc + b_ref[...]).astype(o_ref.dtype)


def linear_pallas(x2d, w, b, *, row_tile=512, col_tile=512):
    """x2d: (M, K), w: (K, N), b: (N,) -> (M, N)."""
    M, K = x2d.shape
    Kw, N = w.shape
    assert K == Kw
    b2d = b.reshape(1, N).astype(jnp.float32)

    tm = _divisor_tile(M, row_tile, 8)
    tn = _divisor_tile(N, col_tile, 128)
    # Column axis outer -> each weight tile is DMA'd once and stays resident
    # across the (inner) row-tile axis.
    grid = (N // tn, M // tm)

    esz = x2d.dtype.itemsize
    est = 2 * (tm * K * esz + K * tn * w.dtype.itemsize + tn * 4 + tm * tn * esz) \
        + tm * tn * 4

    return pl.pallas_call(
        _linear_kernel,
        out_shape=jax.ShapeDtypeStruct((M, N), x2d.dtype),
        grid=grid,
        in_specs=[
            pl.BlockSpec((tm, K), lambda j, i: (i, 0)),     # activation rows
            pl.BlockSpec((K, tn), lambda j, i: (0, j)),     # weight tile (resident)
            pl.BlockSpec((1, tn), lambda j, i: (0, j)),     # bias tile (resident)
        ],
        out_specs=pl.BlockSpec((tm, tn), lambda j, i: (i, j)),
        compiler_params=pltpu.CompilerParams(
            dimension_semantics=("parallel", "parallel"),
            vmem_limit_bytes=_vmem_limit(est),
        ),
    )(x2d, w, b2d)


# ---------------------------------------------------------------------------
# Scaled dot-product attention kernel — G heads x 1 query tile per grid step.
# ---------------------------------------------------------------------------
def _attn_body(q_ref, k_ref, v_ref, m_ref, o_ref, w_ref, scale):
    # q_ref: (1, G, tq, dh)  k_ref/v_ref: (1, G, Sk, dh)
    # m_ref: (1, tq, Sk) or (1, G, tq, Sk) f32 (optional)
    q = q_ref[0] * scale                      # pre-scale q: Sq*dh mults, not Sq*Sk
    k = k_ref[0]
    v = v_ref[0]
    # bf16/f32 inputs straight to the MXU, f32 accumulation.
    s = jnp.einsum("gqd,gkd->gqk", q, k, preferred_element_type=jnp.float32)
    if m_ref is not None:
        s = s + m_ref[0].astype(jnp.float32) * (-1e9)   # torch convention
    s = s - jnp.max(s, axis=-1, keepdims=True)          # stable softmax (f32)
    p = jnp.exp(s)
    inv = pl.reciprocal(jnp.sum(p, axis=-1, keepdims=True), approx=False)
    attn = p * inv
    ctx = jnp.einsum("gqk,gkd->gqd", attn.astype(v.dtype), v,
                     preferred_element_type=jnp.float32)
    o_ref[0] = ctx.astype(o_ref.dtype)
    w_ref[0] = attn.astype(w_ref.dtype)


def _attn_kernel(q_ref, k_ref, v_ref, o_ref, w_ref, *, scale):
    _attn_body(q_ref, k_ref, v_ref, None, o_ref, w_ref, scale)


def _attn_kernel_masked(q_ref, k_ref, v_ref, m_ref, o_ref, w_ref, *, scale):
    _attn_body(q_ref, k_ref, v_ref, m_ref, o_ref, w_ref, scale)


def sdpa_pallas(q, k, v, mask=None):
    """q/k/v: (B, H, S, dh) -> (context (B,H,Sq,dh), weights (B,H,Sq,Sk))."""
    B, H, Sq, dh = q.shape
    Sk = k.shape[2]
    scale = 1.0 / math.sqrt(dh)
    w_dtype = q.dtype                  # torch returns weights in the input dtype
    esz = q.dtype.itemsize
    w_esz = w_dtype.itemsize

    # Query-axis tiling (bounds the working set; tq = Sq for small sequences).
    tq = _divisor_tile(Sq, 256, 8)
    nq = Sq // tq

    # Heads per grid step: biggest divisor of H whose double-buffered blocks
    # (+ f32 score/prob temporaries) fit a conservative VMEM budget.
    def step_bytes(g):
        io = (g * tq * dh * esz            # q block
              + 2 * g * Sk * dh * esz      # k, v blocks (resident across q tiles)
              + g * tq * dh * esz          # context out
              + g * tq * Sk * w_esz)       # attention-weights out
        tmp = 2 * g * tq * Sk * 4          # f32 scores / probabilities
        return 2 * io + tmp

    budget = 24 * 1024 * 1024
    G = H
    while G > 1 and step_bytes(G) > budget:
        G -= 1
        while H % G:
            G -= 1
    grid = (B, H // G, nq)

    in_specs = [
        pl.BlockSpec((1, G, tq, dh), lambda b, g, i: (b, g, i, 0)),
        pl.BlockSpec((1, G, Sk, dh), lambda b, g, i: (b, g, 0, 0)),  # resident over i
        pl.BlockSpec((1, G, Sk, dh), lambda b, g, i: (b, g, 0, 0)),  # resident over i
    ]
    out_specs = (
        pl.BlockSpec((1, G, tq, dh), lambda b, g, i: (b, g, i, 0)),
        pl.BlockSpec((1, G, tq, Sk), lambda b, g, i: (b, g, i, 0)),
    )
    out_shape = (
        jax.ShapeDtypeStruct((B, H, Sq, dh), q.dtype),
        jax.ShapeDtypeStruct((B, H, Sq, Sk), w_dtype),
    )

    operands = [q, k, v]
    mask_bytes = 0
    if mask is None:
        kernel = partial(_attn_kernel, scale=scale)
    else:
        m = jnp.asarray(mask, jnp.float32)
        while m.ndim < 4:
            m = m[None]
        if m.shape[1] == 1:
            # Common case: mask does not vary per head -> keep a single
            # (Bm, Sq, Sk) copy, head-invariant index_map keeps it resident.
            mB = m.shape[0]
            m3 = jnp.broadcast_to(m[:, 0], (mB, Sq, Sk))
            if mB == 1:
                m_spec = pl.BlockSpec((1, tq, Sk), lambda b, g, i: (0, i, 0))
            else:
                m_spec = pl.BlockSpec((1, tq, Sk), lambda b, g, i: (b, i, 0))
            operands.append(m3)
            mask_bytes = 2 * tq * Sk * 4
        else:
            # Rare per-head mask: fall back to full broadcast.
            m4 = jnp.broadcast_to(m, (B, H, Sq, Sk))
            m_spec = pl.BlockSpec((1, G, tq, Sk), lambda b, g, i: (b, g, i, 0))
            operands.append(m4)
            mask_bytes = 2 * G * tq * Sk * 4
        in_specs = in_specs + [m_spec]
        kernel = partial(_attn_kernel_masked, scale=scale)

    ctx, attn = pl.pallas_call(
        kernel,
        out_shape=out_shape,
        grid=grid,
        in_specs=in_specs,
        out_specs=out_specs,
        compiler_params=pltpu.CompilerParams(
            dimension_semantics=("parallel", "parallel", "parallel"),
            vmem_limit_bytes=_vmem_limit(step_bytes(G) + mask_bytes),
        ),
    )(*operands)
    return ctx, attn


# ---------------------------------------------------------------------------
# Full MultiHeadAttention forward.
# ---------------------------------------------------------------------------
def multi_head_attention_forward(params, q, k, v, mask=None, *, num_heads):
    B, Sq, D = q.shape
    Sk = k.shape[1]
    assert D % num_heads == 0
    dh = D // num_heads

    if (q is k) and (k is v):
        # Self-attention: fuse Q/K/V projections -> activation read once and a
        # 3x wider N tile for the MXU.
        wqkv = jnp.concatenate([params["wq"], params["wk"], params["wv"]], axis=1)
        bqkv = jnp.concatenate([params["bq"], params["bk"], params["bv"]], axis=0)
        qkv = linear_pallas(q.reshape(B * Sq, D), wqkv, bqkv)
        qp, kp, vp = jnp.split(qkv, 3, axis=1)
        qp, kp, vp = (qp.reshape(B, Sq, D), kp.reshape(B, Sk, D), vp.reshape(B, Sk, D))
    else:
        qp = linear_pallas(q.reshape(B * Sq, D), params["wq"], params["bq"]).reshape(B, Sq, D)
        kp = linear_pallas(k.reshape(B * Sk, D), params["wk"], params["bk"]).reshape(B, Sk, D)
        vp = linear_pallas(v.reshape(B * Sk, D), params["wv"], params["bv"]).reshape(B, Sk, D)

    # TODO(synk): when dh % 128 == 0, drop these transposes by lane-indexing
    # heads directly in the attention BlockSpecs.
    def split_heads(x, S):
        return x.reshape(B, S, num_heads, dh).transpose(0, 2, 1, 3)

    qh, kh, vh = split_heads(qp, Sq), split_heads(kp, Sk), split_heads(vp, Sk)

    ctx, attn_weights = sdpa_pallas(qh, kh, vh, mask)

    concat = ctx.transpose(0, 2, 1, 3).reshape(B * Sq, D)
    out = linear_pallas(concat, params["wo"], params["bo"]).reshape(B, Sq, D)
    return out, attn_weights


# ---------------------------------------------------------------------------
# Pure-JAX reference (matches the PyTorch module semantics).
# ---------------------------------------------------------------------------
def mha_reference(params, q, k, v, *, num_heads, mask=None):
    B, Sq, D = q.shape
    Sk = k.shape[1]
    dh = D // num_heads
    hi = jax.lax.Precision.HIGHEST

    def lin(x, w, b):
        return jnp.einsum("bsd,de->bse", x, w, precision=hi) + b

    qp = lin(q, params["wq"], params["bq"])
    kp = lin(k, params["wk"], params["bk"])
    vp = lin(v, params["wv"], params["bv"])

    def split(x, S):
        return x.reshape(B, S, num_heads, dh).transpose(0, 2, 1, 3)

    qh, kh, vh = split(qp, Sq), split(kp, Sk), split(vp, Sk)
    logits = jnp.einsum("bhqd,bhkd->bhqk", qh, kh, precision=hi) / jnp.sqrt(jnp.float32(dh))
    if mask is not None:
        logits = logits + jnp.asarray(mask, jnp.float32) * (-1e9)
    w = jax.nn.softmax(logits, axis=-1)
    o = jnp.einsum("bhqk,bhkd->bhqd", w, vh, precision=hi)
    o = o.transpose(0, 2, 1, 3).reshape(B, Sq, D)
    out = jnp.einsum("bsd,de->bse", o, params["wo"], precision=hi) + params["bo"]
    return out, w


def _make_params(key, D):
    ks = jax.random.split(key, 8)
    init = 1.0 / math.sqrt(D)
    return {
        "wq": jax.random.normal(ks[0], (D, D), jnp.float32) * init,
        "wk": jax.random.normal(ks[1], (D, D), jnp.float32) * init,
        "wv": jax.random.normal(ks[2], (D, D), jnp.float32) * init,
        "wo": jax.random.normal(ks[3], (D, D), jnp.float32) * init,
        "bq": jax.random.normal(ks[4], (D,), jnp.float32) * 0.02,
        "bk": jax.random.normal(ks[5], (D,), jnp.float32) * 0.02,
        "bv": jax.random.normal(ks[6], (D,), jnp.float32) * 0.02,
        "bo": jax.random.normal(ks[7], (D,), jnp.float32) * 0.02,
    }


if __name__ == "__main__":
    key = jax.random.PRNGKey(0)

    # ------------------------------------------------------------------ #
    # Test 1: small cross-attention shapes, unmasked + causal mask.
    # ------------------------------------------------------------------ #
    B, S, D, H = 2, 8, 32, 4
    k0, k1, k2, k3, k4 = jax.random.split(key, 5)
    params = _make_params(k0, D)
    q = jax.random.normal(k1, (B, S, D), jnp.float32)
    k = jax.random.normal(k2, (B, S, D), jnp.float32)
    v = jax.random.normal(k3, (B, S, D), jnp.float32)

    out, attn_w = multi_head_attention_forward(params, q, k, v, mask=None, num_heads=H)
    out, attn_w = jax.block_until_ready((out, attn_w))
    ref_out, ref_w = mha_reference(params, q, k, v, num_heads=H, mask=None)
    assert out.shape == (B, S, D) and attn_w.shape == (B, H, S, S)
    assert jnp.allclose(out, ref_out, atol=5e-4, rtol=5e-4)
    assert jnp.allclose(attn_w, ref_w, atol=5e-4, rtol=5e-4)

    causal = (jnp.arange(S)[None, :] > jnp.arange(S)[:, None]).astype(jnp.float32)
    mask = causal[None, None, :, :]                       # (1, 1, S, S)
    out_m, attn_w_m = multi_head_attention_forward(params, q, k, v, mask=mask, num_heads=H)
    out_m, attn_w_m = jax.block_until_ready((out_m, attn_w_m))
    ref_out_m, ref_w_m = mha_reference(params, q, k, v, num_heads=H, mask=mask)
    assert jnp.allclose(out_m, ref_out_m, atol=5e-4, rtol=5e-4)
    assert jnp.allclose(attn_w_m, ref_w_m, atol=5e-4, rtol=5e-4)

    # ------------------------------------------------------------------ #
    # Test 2: self-attention (fused QKV projection), longer sequence that
    # exercises the query-tile grid axis, with a key-padding mask.
    # ------------------------------------------------------------------ #
    B2, S2, D2, H2 = 1, 512, 64, 4
    k5, k6 = jax.random.split(k4)
    params2 = _make_params(k5, D2)
    x = jax.random.normal(k6, (B2, S2, D2), jnp.float32)
    pad_mask = (jnp.arange(S2) >= S2 - 64).astype(jnp.float32)[None, None, None, :]

    out2, w2 = multi_head_attention_forward(params2, x, x, x, mask=pad_mask, num_heads=H2)
    out2, w2 = jax.block_until_ready((out2, w2))
    ref_out2, ref_w2 = mha_reference(params2, x, x, x, num_heads=H2, mask=pad_mask)
    assert out2.shape == (B2, S2, D2) and w2.shape == (B2, H2, S2, S2)
    assert jnp.allclose(out2, ref_out2, atol=2e-3, rtol=2e-3)
    assert jnp.allclose(w2, ref_w2, atol=2e-3, rtol=2e-3)

    print("KERNEL_OK")
</pallas_src>

<mosaic_0001>
module attributes {stable_mosaic.version = 11 : i64} {
  func.func @_linear_kernel(%arg0: i32, %arg1: i32, %arg2: memref<16x32xf32, #tpu.memory_space<vmem>>, %arg3: memref<32x32xf32, #tpu.memory_space<vmem>>, %arg4: memref<1x32xf32, #tpu.memory_space<vmem>>, %arg5: memref<16x32xf32, #tpu.memory_space<vmem>>) attributes {dimension_semantics = [#tpu.dimension_semantics<parallel>, #tpu.dimension_semantics<parallel>], iteration_bounds = array<i64: 1, 1>, scalar_prefetch = 0 : i64, scratch_operands = 0 : i64, tpu.core_type = #tpu.core_type<tc>, window_params = [{transform_indices = @transform_0, window_bounds = array<i64: 16, 32>}, {transform_indices = @transform_1, window_bounds = array<i64: 32, 32>}, {transform_indices = @transform_2, window_bounds = array<i64: 1, 32>}, {transform_indices = @transform_3, window_bounds = array<i64: 16, 32>}]} {
    %c0 = arith.constant 0 : index
    %c0_0 = arith.constant 0 : index
    %0 = vector.load %arg2[%c0, %c0_0] : memref<16x32xf32, #tpu.memory_space<vmem>>, vector<16x32xf32>
    %c0_1 = arith.constant 0 : index
    %c0_2 = arith.constant 0 : index
    %1 = vector.load %arg3[%c0_1, %c0_2] : memref<32x32xf32, #tpu.memory_space<vmem>>, vector<32x32xf32>
    %cst = arith.constant dense<0.000000e+00> : vector<16x32xf32>
    %2 = tpu.matmul %0, %1, %cst {dimension_numbers = #tpu.dot_dimension_numbers<[1], [0], [0], [1], [0, 0, 1, 1], [], []>} : vector<16x32xf32>, vector<32x32xf32>, vector<16x32xf32> -> vector<16x32xf32>
    %c0_3 = arith.constant 0 : index
    %c0_4 = arith.constant 0 : index
    %3 = vector.load %arg4[%c0_3, %c0_4] : memref<1x32xf32, #tpu.memory_space<vmem>>, vector<1x32xf32>
    %4 = vector.broadcast %3 : vector<1x32xf32> to vector<16x32xf32>
    %5 = arith.addf %2, %4 : vector<16x32xf32>
    %c0_5 = arith.constant 0 : index
    %c0_6 = arith.constant 0 : index
    %6 = vector.load %arg5[%c0_5, %c0_6] : memref<16x32xf32, #tpu.memory_space<vmem>>, vector<16x32xf32>
    tpu.vector_store %arg5[%c0_5, %c0_6], %5 {strides = array<i32>} : memref<16x32xf32, #tpu.memory_space<vmem>>, vector<16x32xf32>,
    return
  }
  func.func @transform_0(%arg0: i32, %arg1: i32) -> (i32, i32) {
    %c0_i32 = arith.constant 0 : i32
    %c0_i32_0 = arith.constant 0 : i32
    return %arg1, %c0_i32 : i32, i32
  }
  func.func @transform_1(%arg0: i32, %arg1: i32) -> (i32, i32) {
    %c0_i32 = arith.constant 0 : i32
    %c0_i32_0 = arith.constant 0 : i32
    return %c0_i32, %arg0 : i32, i32
  }
  func.func @transform_2(%arg0: i32, %arg1: i32) -> (i32, i32) {
    %c0_i32 = arith.constant 0 : i32
    %c0_i32_0 = arith.constant 0 : i32
    return %c0_i32, %arg0 : i32, i32
  }
  func.func @transform_3(%arg0: i32, %arg1: i32) -> (i32, i32) {
    %c0_i32 = arith.constant 0 : i32
    return %arg1, %arg0 : i32, i32
  }
}

</mosaic_0001>

<bundles_post_ra>
// kernel: tpu_custom_call.1
= control target key start
LH: loop header
LB: loop body
LE: loop exit
PB: predicated region body
PF: predicated region fallthrough
CT: control target
= control target key end

     0   :  { %8 = vsyncpa [#allocation3], 0  ;;  %s340_s0 = inlined_call_operand.hbm [shape: f32[16,32], index: 0, kind: input, shape index: {}]   ;;  %s341_s1 = inlined_call_operand.hbm [shape: f32[32,32], index: 1, kind: input, shape index: {}]   ;;  %s342_s2 = inlined_call_operand.vmem [shape: f32[1,32], index: 2, kind: input, shape index: {}]   ;;  %s343_s3 = inlined_call_operand.hbm [shape: f32[16,32], index: 3, kind: output, shape index: {}]  }
   0x1   :  { %9 = vsyncpa [#allocation6], 0 }
   0x2   :  { %10 = vsyncpa [#allocation4], 0  ;;  %s263_s12 = smov [#allocation2]   ;;  %s191_s16 = scalar_lea.hbm %s340_s0, 256 }
   0x3   :  { %s16_s13 = sshll.u32 %s263_s12, 4  ;;  %p192_p0 = scmp.ne.s32.totalorder %s340_s0, %s191_s16  ;;  %s17_s13 = int_to_ptr.vmem [resolvable:$true] %s16_s13 }
   0x4   :  { %p195_p1 = scmp.lt.u32.totalorder %s191_s16, %s340_s0 }
   0x6   :  { %p197_p2 = pnand %p195_p1, %p192_p0 }
   0x8   :  { %200 = shalt.err (!%p197_p2)
}
   0x9   :  { %s201_s21 = scalar_lea.vmem %s17_s13, 256  ;;  %p206_p4 = scmp.lt.s32.totalorder %s17_s13, %s17_s13 }
   0xa   :  { %p202_p3 = scmp.ne.s32.totalorder %s17_s13, %s201_s21  ;;  %p207_p5 = scmp.lt.s32.totalorder %s201_s21, %s201_s21 }
   0xc   :  { %p208_p6 = por %p207_p5, %p206_p4 }
   0xe   :  { %p209_p7 = pnand %p208_p6, %p202_p3 }
  0x10   :  { %212 = shalt.err (!%p209_p7)
}
  0x11   :  { %s264_s22 = smov 128   ;;  %s265_s23 = smov 8  }
  0x12   :  { %22 = dma.hbm_to_vmem [thread:$0]  %s340_s0, 256, %s17_s13, [#allocation3], %s264_s22, %s264_s22, %s265_s23  }
  0x13   :  { %s266_s26 = smov [#allocation5]   ;;  %s213_s30 = scalar_lea.hbm %s341_s1, 512 }
  0x14   :  { %s28_s27 = sshll.u32 %s266_s26, 4  ;;  %p214_p8 = scmp.ne.s32.totalorder %s341_s1, %s213_s30  ;;  %s29_s27 = int_to_ptr.vmem [resolvable:$true] %s28_s27 }
  0x15   :  { %p217_p9 = scmp.lt.u32.totalorder %s213_s30, %s341_s1 }
  0x17   :  { %p219_p10 = pnand %p217_p9, %p214_p8 }
  0x19   :  { %222 = shalt.err (!%p219_p10)
}
  0x1a   :  { %s223_s8 = scalar_lea.vmem %s29_s27, 512  ;;  %p228_p12 = scmp.lt.s32.totalorder %s29_s27, %s29_s27 }
  0x1b   :  { %p224_p11 = scmp.ne.s32.totalorder %s29_s27, %s223_s8  ;;  %p229_p13 = scmp.lt.s32.totalorder %s223_s8, %s223_s8 }
  0x1d   :  { %p230_p0 = por %p229_p13, %p228_p12 }
  0x1f   :  { %p231_p1 = pnand %p230_p0, %p224_p11 }
  0x21   :  { %234 = shalt.err (!%p231_p1)
}
  0x22   :  { %34 = dma.hbm_to_vmem [thread:$0]  %s341_s1, 512, %s29_s27, [#allocation6], %s264_s22, %s264_s22, %s265_s23  }
  0x23   :  { %257 = dma.done.wait [#allocation3], 256  }
  0x24   :  { %258 = vsyncadd [#allocation3], 4294967040 }
  0x25   :  { %259 = dma.done.wait [#allocation6], 512  }
  0x26   :  { %260 = vsyncadd [#allocation6], 4294966784  ;;  %vm56_vm0 = vcmask 261120   ;;  %v45_v0 = vld [vmem:[#allocation5] sm:$0xff]  ;;  %v46_v1 = vld [vmem:[#allocation5 + $0x8] sm:$0xff]  ;;  %s267_s11 = smov [#allocation7]  }
  0x27   :  { %v47_v2 = vld [vmem:[#allocation5 + $0x10] sm:$0xff]  ;;  %v178_v3 = vpack.c.bf16 %v46_v1, %v45_v0  ;;  %v48_v4 = vld [vmem:[#allocation5 + $0x18] sm:$0xff]  ;;  %s145_s12 = sshll.u32 %s267_s11, 4  ;;  %s146_s12 = int_to_ptr.vmem [resolvable:$true] %s145_s12 }
  0x28   :  { %v43_v5 = vld [vmem:[#allocation2] sm:$0xff]  ;;  %v182_v6 = vpack.c.bf16 %v48_v4, %v47_v2  ;;  %v44_v7 = vld [vmem:[#allocation2 + $0x8] sm:$0xff]  ;;  %s235_s13 = scalar_lea.vmem %s146_s12, 256  ;;  %p240_p3 = scmp.lt.s32.totalorder %s146_s12, %s146_s12 }
  0x29   :  { %175 = vmatprep.mubr.msk.f32.mxu0 %vm56_vm0, %v43_v5  ;;  %179 = vmatprep.subr.bf16.mxu0 %v178_v3  ;;  %v158_v8 = vld [vmem:[%s342_s2] ss:$0 sm:$0xff]  ;;  %p236_p2 = scmp.ne.s32.totalorder %s146_s12, %s235_s13  ;;  %p241_p4 = scmp.lt.s32.totalorder %s235_s13, %s235_s13 }
  0x2a   :  { %181 = vmatpush3.bf16.msra.mxu0 %v178_v3 }
  0x2b   :  { %183 = vmatprep.subr.bf16.mxu0 %v182_v6  ;;  %p242_p5 = por %p241_p4, %p240_p3 }
  0x2d   :  { %p243_p6 = pnand %p242_p5, %p236_p2 }
  0x2e   :  { %185 = vmatpush3.bf16.msra.mxu0 %v182_v6 }
  0x31   :  { %176 = vmatmul.mubr.msk.f32.vlgmr.msra.gmra.mrb[0].mxu0 %vm56_vm0, %v44_v7 }
 0x104   :  { %v177_v9 = vpop.f32.mrb[0].mxu0 }
 0x105   :  { %v135_v10 = vadd.f32 %v177_v9, %v158_v8  ;;  %v129_v11 = vpop.f32.mrb[1].mxu0 }
 0x106   :  { %v130_v12 = vadd.f32 %v158_v8, %v129_v11 }
 0x107   :  { %139 = vst.msk [vmem:[#allocation7 + $0x8] sm:$0xff] %vm56_vm0, %v135_v10 }
 0x108   :  { %138 = vst.msk [vmem:[#allocation7] sm:$0xff] %vm56_vm0, %v130_v12 }
 0x109   :  { %246 = shalt.err (!%p243_p6)
}
 0x10a   :  { %s247_s15 = scalar_lea.hbm %s343_s3, 256 }
 0x10b   :  { %p248_p7 = scmp.ne.s32.totalorder %s343_s3, %s247_s15  ;;  %p251_p8 = scmp.lt.u32.totalorder %s247_s15, %s343_s3 }
 0x10d   :  { %p253_p9 = pnand %p251_p8, %p248_p7 }
 0x10f   :  { %256 = shalt.err (!%p253_p9)
}
 0x110   :  { %151 = dma.vmem_to_hbm [thread:$0]  %s146_s12, 256, %s343_s3, [#allocation4], %s264_s22, %s264_s22, %s265_s23  }
 0x111   :  { %261 = dma.done.wait [#allocation4], 256  }
 0x112   :  { %262 = vsyncadd [#allocation4], 4294967040 }
 0x113   :  { %155 = vsyncpa [#allocation3], 1 }
 0x114   :  { %156 = vsyncpa [#allocation6], 1 }
 0x115   :  { %157 = vsyncpa [#allocation4], 1 }

</bundles_post_ra>
